<compile_context>
chip_gen: v7x
topology: tpu7x:2x2x1
jax: 0.10.0
libtpu: 0.0.40
codegen_flags: <defaults>
</compile_context>

<pallas_src>
import jax
import jax.numpy as jnp
from jax.experimental import pallas as pl
from jax.experimental.pallas import tpu as pltpu

LANE = 128


def _round_up(x, m):
    return ((x + m - 1) // m) * m


# ----------------------------- Pallas kernels --------------------------------
def gcn_layer1_kernel(a_ref, xw_ref, b_ref, h_ref):
    # H_tile = relu(A_tile @ (X @ W1) + b1); bf16 operands, f32 accumulation.
    agg = jnp.dot(a_ref[...], xw_ref[...], preferred_element_type=jnp.float32)
    h_ref[...] = jnp.maximum(agg + b_ref[...], 0.0).astype(h_ref.dtype)


def gcn_layer2_kernel(a_ref, h_ref, w2_ref, b2_ref, o_ref):
    # Out_tile = (A_tile @ H) @ W2 + b2; both matmuls on the MXU, f32 accumulate.
    agg = jnp.dot(a_ref[...], h_ref[...], preferred_element_type=jnp.float32)
    out = jnp.dot(agg.astype(jnp.bfloat16), w2_ref[...],
                  preferred_element_type=jnp.float32)
    o_ref[...] = out + b2_ref[...]


# ----------------------------- pallas_call wrapper ----------------------------
def _aggregate_call(kernel, a_pad, residents, out_dtype, row_tile, out_cols):
    """Row-tiled aggregation: per tile i, kernel(A[i*tm:(i+1)*tm, :], *residents)."""
    n_pad = a_pad.shape[0]
    num_tiles = n_pad // row_tile

    in_specs = [pl.BlockSpec((row_tile, n_pad), lambda i: (i, 0))]
    for arr in residents:
        # Small resident operands: full-array block, constant index -> DMA'd once.
        in_specs.append(pl.BlockSpec(arr.shape, lambda i: (0, 0)))
    out_spec = pl.BlockSpec((row_tile, out_cols), lambda i: (i, 0))

    itemsize = lambda arr: arr.size * jnp.dtype(arr.dtype).itemsize
    out_bytes = n_pad * out_cols * jnp.dtype(out_dtype).itemsize
    resident_bytes = sum(itemsize(r) for r in residents)
    bytes_accessed = itemsize(a_pad) + resident_bytes + out_bytes
    flops = 2 * n_pad * n_pad * out_cols  # aggregation matmul dominates

    # 2x for double-buffered A strips + outputs, residents counted once each
    # (constant index), plus headroom.
    vmem_needed = (2 * row_tile * n_pad * 2
                   + 2 * row_tile * out_cols * jnp.dtype(out_dtype).itemsize
                   + 2 * resident_bytes)
    vmem_limit = int(min(max(vmem_needed + (4 << 20), 16 << 20), 48 << 20))

    return pl.pallas_call(
        kernel,
        out_shape=jax.ShapeDtypeStruct((n_pad, out_cols), out_dtype),
        grid_spec=pltpu.PrefetchScalarGridSpec(
            num_scalar_prefetch=0,
            grid=(num_tiles,),
            in_specs=in_specs,
            out_specs=out_spec,
        ),
        compiler_params=pltpu.CompilerParams(
            dimension_semantics=("parallel",),
            vmem_limit_bytes=vmem_limit,
        ),
        cost_estimate=pl.CostEstimate(
            flops=flops, transcendentals=0, bytes_accessed=bytes_accessed),
    )(a_pad, *residents)


# ------------------------------- Forward pass ---------------------------------
def gcn_anomaly_detector(a_hat, x, w1, b1, w2, b2, *, row_tile=256):
    """Fused 2-layer GCN forward (eval mode) using row-tiled Pallas aggregation.

    a_hat: [N, N] f32 normalized adjacency, x: [N, Cin], w1: [Cin, H], b1: [1, H],
    w2: [H, out], b2: [1, out]  ->  out: [N, out] f32.
    """
    n = x.shape[0]
    hidden = w1.shape[1]
    out_ch = w2.shape[1]
    hp = _round_up(hidden, LANE)          # lane-dense hidden width
    op = _round_up(out_ch, LANE)          # lane-dense output width

    row_tile = max(16, min(row_tile, _round_up(n, 16)))   # bf16 sublane aligned
    n_pad = _round_up(n, row_tile)

    f32 = jnp.float32
    bf16 = jnp.bfloat16

    # Pad + cast operands. Zero padding is exact: padded A rows/cols are zero,
    # padded hidden/out channels carry zero weights and biases.
    a_p = jnp.zeros((n_pad, n_pad), bf16).at[:n, :n].set(a_hat.astype(bf16))

    # Hoisted feature transform (tiny): XW1 = X @ W1, computed once in f32.
    xw1 = x.astype(f32) @ w1.astype(f32)
    xw1_p = jnp.zeros((n_pad, hp), bf16).at[:n, :hidden].set(xw1.astype(bf16))
    b1_p = jnp.zeros((1, hp), f32).at[:, :hidden].set(b1.astype(f32))

    w2_p = jnp.zeros((hp, op), bf16).at[:hidden, :out_ch].set(w2.astype(bf16))
    b2_p = jnp.zeros((1, op), f32).at[:, :out_ch].set(b2.astype(f32))

    # Layer 1: H = relu(A_hat @ XW1 + b1), stored bf16 for layer 2's MXU.
    h = _aggregate_call(gcn_layer1_kernel, a_p, (xw1_p, b1_p), bf16, row_tile, hp)

    # Dropout(0.5): identity in eval/inference mode.

    # Layer 2: Out = (A_hat @ H) @ W2 + b2.
    out = _aggregate_call(gcn_layer2_kernel, a_p, (h, w2_p, b2_p), f32, row_tile, op)
    return out[:n, :out_ch]


# ------------------------------ JAX glue -------------------------------------
def build_normalized_adjacency(edge_index, num_nodes):
    """Dense A_hat = D^{-1/2}(A + I)D^{-1/2} from edge_index [2, E] (src, dst)."""
    src, dst = edge_index[0], edge_index[1]
    a = jnp.zeros((num_nodes, num_nodes), dtype=jnp.float32)
    a = a.at[dst, src].set(1.0)                       # message src -> dst
    idx = jnp.arange(num_nodes)
    a = a.at[idx, idx].set(1.0)                       # add *remaining* self-loops
    deg = jnp.sum(a, axis=1)
    d_inv_sqrt = jnp.where(deg > 0, 1.0 / jnp.sqrt(deg), 0.0)
    return d_inv_sqrt[:, None] * a * d_inv_sqrt[None, :]


def init_params(key, in_channels, hidden_channels=32, out_channels=2):
    k1, k2 = jax.random.split(key)
    lim1 = (6.0 / (in_channels + hidden_channels)) ** 0.5
    lim2 = (6.0 / (hidden_channels + out_channels)) ** 0.5
    w1 = jax.random.uniform(k1, (in_channels, hidden_channels), jnp.float32, -lim1, lim1)
    w2 = jax.random.uniform(k2, (hidden_channels, out_channels), jnp.float32, -lim2, lim2)
    b1 = jnp.zeros((1, hidden_channels), jnp.float32)
    b2 = jnp.zeros((1, out_channels), jnp.float32)
    return w1, b1, w2, b2


def reference_forward(a_hat, x, w1, b1, w2, b2):
    """Pure-JAX reference mirroring the kernel's bf16-operand / f32-accumulate math."""
    q = lambda v: v.astype(jnp.bfloat16).astype(jnp.float32)
    ab = q(a_hat)
    xw1 = q(x @ w1)
    h = jnp.maximum(ab @ xw1 + b1, 0.0)
    agg = q(ab @ q(h))
    return agg @ q(w2) + b2


if __name__ == "__main__":
    key = jax.random.PRNGKey(0)
    k_x, k_p = jax.random.split(key)

    num_nodes = 64
    in_channels = 8
    hidden_channels = 32
    row_tile = 16          # -> grid of 4 row tiles per layer (pipelined A strips)

    # Deterministic node features.
    x = jax.random.normal(k_x, (num_nodes, in_channels), dtype=jnp.float32)

    # Deterministic graph: bidirectional ring over the nodes.
    src = jnp.arange(num_nodes, dtype=jnp.int32)
    dst = (src + 1) % num_nodes
    edge_index = jnp.stack(
        [jnp.concatenate([src, dst]), jnp.concatenate([dst, src])], axis=0
    )  # [2, 2*num_nodes]

    a_hat = build_normalized_adjacency(edge_index, num_nodes)
    w1, b1, w2, b2 = init_params(k_p, in_channels, hidden_channels)

    out = gcn_anomaly_detector(a_hat, x, w1, b1, w2, b2, row_tile=row_tile)
    out = jax.block_until_ready(out)

    ref = reference_forward(a_hat, x, w1, b1, w2, b2)
    assert out.shape == (num_nodes, 2)
    # bf16 operands with f32 accumulation -> looser tolerance than pure f32.
    assert jnp.allclose(out, ref, atol=2e-2, rtol=2e-2), (
        float(jnp.max(jnp.abs(out - ref))))

    print("KERNEL_OK")
</pallas_src>

<mosaic_0001>
module attributes {stable_mosaic.version = 11 : i64} {
  func.func @gcn_layer1_kernel(%arg0: i32, %arg1: memref<16x64xbf16, #tpu.memory_space<vmem>>, %arg2: memref<64x128xbf16, #tpu.memory_space<vmem>>, %arg3: memref<1x128xf32, #tpu.memory_space<vmem>>, %arg4: memref<16x128xbf16, #tpu.memory_space<vmem>>) attributes {dimension_semantics = [#tpu.dimension_semantics<parallel>], iteration_bounds = array<i64: 4>, scalar_prefetch = 0 : i64, scratch_operands = 0 : i64, tpu.core_type = #tpu.core_type<tc>, window_params = [{transform_indices = @transform_0, window_bounds = array<i64: 16, 64>}, {pipeline_mode = #tpu.pipeline_mode<synchronous>, transform_indices = @transform_1, window_bounds = array<i64: 64, 128>}, {pipeline_mode = #tpu.pipeline_mode<synchronous>, transform_indices = @transform_2, window_bounds = array<i64: 1, 128>}, {transform_indices = @transform_3, window_bounds = array<i64: 16, 128>}]} {
    %c0 = arith.constant 0 : index
    %c0_0 = arith.constant 0 : index
    %0 = vector.load %arg1[%c0, %c0_0] : memref<16x64xbf16, #tpu.memory_space<vmem>>, vector<16x64xbf16>
    %c0_1 = arith.constant 0 : index
    %c0_2 = arith.constant 0 : index
    %1 = vector.load %arg2[%c0_1, %c0_2] : memref<64x128xbf16, #tpu.memory_space<vmem>>, vector<64x128xbf16>
    %cst = arith.constant dense<0.000000e+00> : vector<16x128xf32>
    %2 = tpu.matmul %0, %1, %cst {dimension_numbers = #tpu.dot_dimension_numbers<[1], [0], [0], [1], [0, 0, 1, 1], [], []>} : vector<16x64xbf16>, vector<64x128xbf16>, vector<16x128xf32> -> vector<16x128xf32>
    %c0_3 = arith.constant 0 : index
    %c0_4 = arith.constant 0 : index
    %3 = vector.load %arg3[%c0_3, %c0_4] : memref<1x128xf32, #tpu.memory_space<vmem>>, vector<1x128xf32>
    %4 = vector.broadcast %3 : vector<1x128xf32> to vector<16x128xf32>
    %5 = arith.addf %2, %4 : vector<16x128xf32>
    %cst_5 = arith.constant 0.000000e+00 : f32
    %6 = vector.broadcast %cst_5 : f32 to vector<16x128xf32>
    %7 = arith.maximumf %5, %6 : vector<16x128xf32>
    %8 = arith.truncf %7 : vector<16x128xf32> to vector<16x128xbf16>
    %c0_6 = arith.constant 0 : index
    %c0_7 = arith.constant 0 : index
    %9 = vector.load %arg4[%c0_6, %c0_7] : memref<16x128xbf16, #tpu.memory_space<vmem>>, vector<16x128xbf16>
    tpu.vector_store %arg4[%c0_6, %c0_7], %8 {strides = array<i32>} : memref<16x128xbf16, #tpu.memory_space<vmem>>, vector<16x128xbf16>,
    return
  }
  func.func @transform_0(%arg0: i32) -> (i32, i32) {
    %c0_i32 = arith.constant 0 : i32
    %c0_i32_0 = arith.constant 0 : i32
    return %arg0, %c0_i32 : i32, i32
  }
  func.func @transform_1(%arg0: i32) -> (i32, i32) {
    %c0_i32 = arith.constant 0 : i32
    %c0_i32_0 = arith.constant 0 : i32
    %c0_i32_1 = arith.constant 0 : i32
    return %c0_i32, %c0_i32_0 : i32, i32
  }
  func.func @transform_2(%arg0: i32) -> (i32, i32) {
    %c0_i32 = arith.constant 0 : i32
    %c0_i32_0 = arith.constant 0 : i32
    %c0_i32_1 = arith.constant 0 : i32
    return %c0_i32, %c0_i32_0 : i32, i32
  }
  func.func @transform_3(%arg0: i32) -> (i32, i32) {
    %c0_i32 = arith.constant 0 : i32
    %c0_i32_0 = arith.constant 0 : i32
    return %arg0, %c0_i32 : i32, i32
  }
}

</mosaic_0001>

<bundles_post_ra>
// kernel: tpu_custom_call.1
= control target key start
LH: loop header
LB: loop body
LE: loop exit
PB: predicated region body
PF: predicated region fallthrough
CT: control target
= control target key end

     0   :  { %8 = vsyncpa [#allocation3], 0  ;;  %s886_s0 = inlined_call_operand.hbm [shape: bf16[64,64], index: 0, kind: input, shape index: {}]   ;;  %s887_s1 = inlined_call_operand.hbm [shape: bf16[64,128], index: 1, kind: input, shape index: {}]   ;;  %s888_s2 = inlined_call_operand.vmem [shape: f32[1,128], index: 2, kind: input, shape index: {}]   ;;  %s889_s3 = inlined_call_operand.hbm [shape: bf16[64,128], index: 3, kind: output, shape index: {}]  }
   0x1   :  { %10 = vsyncpa [#allocation3 + $0x1], 0 }
   0x2   :  { %11 = vsyncpa [#allocation6], 0 }
   0x3   :  { %12 = vsyncpa [#allocation4], 0 }
   0x4   :  { %14 = vsyncpa [#allocation4 + $0x1], 0  ;;  %s685_s12 = smov 0   ;;  %s687_s13 = smov 0  }
   0x5   :  { %s689_s14 = smov 0   ;;  %s691_s15 = smov 0  }
   0x6 LB: > { %s706_s16 = sadd.s32 4294967295, %s654_s15   ;;  %s407_s17 = sadd.s32 4294967294, %s654_s15   ;;  %s654_s15 = sphi %s691_s15, %s908_s15   ;;  %s650_s14 = sphi %s689_s14, %s907_s14   ;;  %s646_s13 = sphi %s687_s13, %s906_s13   ;;  %s642_s12 = sphi %s685_s12, %s905_s12  }
   0x7   : > { %p40_p0 = scmp.ne.s32.totalorder %s646_s13, %s642_s12  ;;  %p890_p1 = scmp.eq.s32.totalorder %s706_s16, 0 }
   0x8   : > { %p112_p3 = scmp.eq.s32.totalorder %s407_s17, 3  ;;  %p408_p5 = scmp.ge.s32.totalorder %s654_s15, 1 }
   0x9   : > { %p715_p4 = por %p890_p1, %p40_p0  ;;  %p119_p7 = scmp.lt.s32.totalorder %s654_s15, 5 }
   0xa   : > { %p720_p6 = por %p112_p3, %p40_p0  ;;  %s656_s21 = smov [#allocation5]  }
   0xb   : > { %s893_s18 = scalar_select %p715_p4, 1, 0 }
   0xc   : > { %s894_s19 = scalar_select %p720_p6, 1, 0 }
   0xd   : > { %p725_p8 = pnand %p408_p5, %p119_p7  ;;  %s131_s22 = sshll.u32 %s656_s21, 4  ;;  %s132_s22 = int_to_ptr.vmem [resolvable:$true] %s131_s22 }
   0xe   : > { %s738_s24 = sadd.s32 1, %s654_s15   ;;  %s27_s25 = sadd.s32 1, %s650_s14 }
   0xf   : > { %s895_s20 = scalar_select %p725_p8, 1, 0 }
  0x10   : > { %p466_p9 = pneg %p725_p8  ;;  %s24_s26 = ssub.s32 %s654_s15, %s738_s24 }
  0x11   : > { %s526_s29 = scalar_lea.hbm %s887_s1, 512 }
  0x12   : > { %p733_p10 = pnand %p466_p9, %p890_p1  ;;  %p527_p11 = scmp.ne.s32.totalorder %s887_s1, %s526_s29 }
  0x13   : > { %p533_p3 = scmp.lt.u32.totalorder %s526_s29, %s887_s1 }
  0x14   : > { %p528_p12 = pneg %p733_p10 }
  0x16   : > { %p529_p13 = pnand %p528_p12, %p527_p11 }
  0x18   : > { %p530_p0 = pneg %p529_p13 }
  0x1a   : > { %p535_p5 = pnand %p533_p3, %p530_p0 }
  0x1c   : > { %538 = shalt.err (!%p535_p5)
}
  0x1d   : > { %s539_s7 = scalar_lea.vmem %s132_s22, 512  ;;  %p547_p2 = scmp.lt.s32.totalorder %s132_s22, %s132_s22 }
  0x1e   : > { %p540_p7 = scmp.ne.s32.totalorder %s132_s22, %s539_s7  ;;  %p548_p6 = scmp.lt.s32.totalorder %s539_s7, %s539_s7 }
  0x20   : > { %p542_p9 = pnand %p540_p7, %p528_p12  ;;  %p549_p4 = por %p548_p6, %p547_p2 }
  0x22   : > { %p543_p1 = pneg %p542_p9 }
  0x24   : > { %p550_p8 = pnand %p549_p4, %p543_p1 }
  0x26   : > { %553 = shalt.err (!%p550_p8)
}
  0x27   : > { %s657_s8 = smov 64   ;;  %s658_s9 = smov 4  }
  0x28   : > { %469 = dma.hbm_to_vmem [thread:$0]  (!%p733_p10), %s887_s1, 512, %s132_s22, [#allocation6], %s657_s8, %s657_s8, %s658_s9  }
  0x29   : > { %p25_p1 = scmp.eq.s32.totalorder %s24_s26, 0  ;;  %p34_p2 = scmp.ne.s32.totalorder %s650_s14, %s646_s13 }
  0x2a   : > { %p35_p4 = scmp.eq.s32.totalorder %s654_s15, 0  ;;  %p479_p6 = scmp.lt.s32.totalorder %s654_s15, 4 }
  0x2b   : > { %s767_s17 = scalar_select %p25_p1, %s650_s14, %s27_s25  }
  0x2c   : > { %p36_p8 = por %p35_p4, %p34_p2  ;;  %p897_p11 = scmp.eq.s32.totalorder %s706_s16, 3 }
  0x2d   : > { %s148_s23 = sand.u32 1, %s650_s14   ;;  %s432_s27 = sshll.u32 %s654_s15, 7 }
  0x2e   : > { %p771_p12 = por %p897_p11, %p34_p2  ;;  %s411_s28 = sshll.u32 %s148_s23, 3 }
  0x2f   : > { %s780_s4 = scalar_lea.hbm %s886_s0, %s432_s27  ;;  %s152_s22 = scalar_lea.vmem [#allocation2], %s411_s28 }
  0x30   : > { %s159_s25 = sshll.u32 %s152_s22, 4  ;;  %p782_p10 = pnand %p479_p6, %p36_p8  ;;  %s786_s25 = int_to_ptr.vmem [resolvable:$true] %s159_s25 }
  0x31   : > { %s788_s5 = scalar_lea.sflag [#allocation3], %s148_s23  ;;  %s554_s6 = scalar_lea.hbm %s780_s4, 128 }
  0x32   : > { %p555_p13 = scmp.ne.s32.totalorder %s780_s4, %s554_s6  ;;  %p556_p0 = pneg %p782_p10 }
  0x33   : > { %s559_s11 = scalar_lea.hbm %s886_s0, 512  ;;  %p560_p7 = scmp.lt.u32.totalorder %s780_s4, %s886_s0 }
  0x34   : > { %p557_p3 = pnand %p556_p0, %p555_p13  ;;  %p561_p9 = scmp.lt.u32.totalorder %s559_s11, %s554_s6 }
  0x35   : > { %p563_p2 = scmp.lt.u32.totalorder %s554_s6, %s780_s4 }
  0x36   : > { %p558_p5 = pneg %p557_p3  ;;  %p562_p1 = por %p561_p9, %p560_p7 }
  0x38   : > { %p564_p4 = por %p563_p2, %p562_p1 }
  0x3a   : > { %p565_p6 = pnand %p564_p4, %p558_p5 }
  0x3c   : > { %568 = shalt.err (!%p565_p6)
}
  0x3d   : > { %s569_s23 = scalar_lea.vmem %s786_s25, 128  ;;  %s659_s29 = smov [#allocation2]  }
  0x3e   : > { %p570_p8 = scmp.ne.s32.totalorder %s786_s25, %s569_s23  ;;  %s574_s30 = sshll.u32 %s659_s29, 4  ;;  %s575_s30 = int_to_ptr.vmem [resolvable:$false] %s574_s30 }
  0x3f   : > { %s576_s22 = scalar_lea.vmem %s575_s30, 256  ;;  %p577_p3 = scmp.lt.s32.totalorder %s786_s25, %s575_s30 }
  0x40   : > { %p572_p11 = pnand %p570_p8, %p556_p0  ;;  %p578_p7 = scmp.lt.s32.totalorder %s576_s22, %s569_s23 }
  0x42   : > { %p573_p13 = pneg %p572_p11  ;;  %p579_p9 = por %p578_p7, %p577_p3 }
  0x44   : > { %p580_p1 = pnand %p579_p9, %p573_p13 }
  0x46   : > { %583 = shalt.err (!%p580_p1)
}
  0x47   : > { %473 = dma.hbm_to_vmem [thread:$0]  (!%p782_p10), %s780_s4, 128, %s786_s25, %s788_s5, %s657_s8, %s657_s8, %s658_s9  }
  0x48   : > { %p900_p0 = scmp.ne.s32.totalorder %s895_s20, 0 }
  0x49   : > { %s822_s6 = sand.u32 (!%p900_p0), 1, %s646_s13   ;;  %p901_p5 = scmp.ne.s32.totalorder (!%p900_p0), %s893_s18, 0 }
  0x4a   : > { %171 = sbr.rel (%p900_p0) target bundleno = 337 (0x151), region = 32  ;;  %s415_s7 = sshll.u32 (!%p900_p0), %s822_s6, 3 }
  0x4b   : > { %s174_s10 = scalar_lea.sflag (!%p900_p0), [#allocation3], %s822_s6  ;;  %s177_s11 = scalar_lea.vmem (!%p900_p0), [#allocation2], %s415_s7 }
  0x51   : > { %629 = dma.done.wait (%p901_p5), %s174_s10, 128  }
  0x52   : > { %631 = vsyncadd (%p901_p5), %s174_s10, 4294967168  ;;  %p902_p2 = scmp.eq.s32.totalorder %s706_s16, 0 }
  0x54   : > { %633 = dma.done.wait (%p902_p2), [#allocation6], 512   ;;  %p903_p10 = pmov %p902_p2 }
  0x55   : > { %v660_v0 = vmov 0.0   ;;  %vm661_vm0 = vmmov 0   ;;  %v521_v1 = vld [vmem:[#allocation5] sm:$0xff]   ;;  %v522_v2 = vld [vmem:[#allocation5 + $0x8] sm:$0xff]   ;;  %v523_v3 = vld [vmem:[#allocation5 + $0x10] sm:$0xff]   ;;  %vm253_vm1 = vcmask 523264  }
  0x56   : > { %635 = vsyncadd (%p903_p10), [#allocation6], 4294966784  ;;  %446 = vmatprep.subr.bf16.mxu0 %v660_v0  ;;  %454 = vmatprep.mubr.msk.bf16.mxu0 %vm661_vm0, %v660_v0  ;;  %v524_v4 = vld [vmem:[#allocation5 + $0x18] sm:$0xff]   ;;  %v418_v6 = vld [vmem:[%s888_s2] ss:$0 sm:$0xff]  ;;  %s203_s8 = scalar_lea.vmem [#allocation7], %s415_s7 }
  0x57   : > { %447 = vmatpush3.bf16.msra.mxu0 %v521_v1  ;;  %v525_v5 = vld [vmem:[%s177_s11] sm:$0xff]   ;;  %s324_s9 = sshll.u32 %s203_s8, 4  ;;  %s435_s4 = sshll.u32 %s706_s16, 7  ;;  %s838_s9 = int_to_ptr.vmem [resolvable:$true] %s324_s9 }
  0x58   : > { %448 = vmatprep.subr.bf16.mxu0 %v660_v0  ;;  %s843_s5 = scalar_lea.hbm %s889_s3, %s435_s4  ;;  %s311_s27 = scalar_lea.sflag [#allocation4], %s822_s6 }
  0x59   : > { %s584_s28 = scalar_lea.vmem %s838_s9, 128  ;;  %s662_s16 = smov [#allocation7]  }
  0x5a   : > { %p585_p4 = scmp.ne.s32.totalorder %s838_s9, %s584_s28  ;;  %s588_s23 = sshll.u32 %s662_s16, 4  ;;  %s589_s23 = int_to_ptr.vmem [resolvable:$false] %s588_s23 }
  0x5b   : > { %449 = vmatpush3.bf16.msra.mxu0 %v522_v2  ;;  %s590_s29 = scalar_lea.vmem %s589_s23, 256  ;;  %p591_p11 = scmp.lt.s32.totalorder %s838_s9, %s589_s23 }
  0x5c   : > { %450 = vmatprep.subr.bf16.mxu0 %v660_v0  ;;  %p586_p6 = pnand %p585_p4, %p771_p12  ;;  %p592_p13 = scmp.lt.s32.totalorder %s590_s29, %s584_s28 }
  0x5e   : > { %p587_p8 = pneg %p586_p6  ;;  %p593_p3 = por %p592_p13, %p591_p11 }
  0x5f   : > { %451 = vmatpush3.bf16.msra.mxu0 %v523_v3 }
  0x60   : > { %452 = vmatprep.subr.bf16.mxu0 %v660_v0  ;;  %p594_p7 = pnand %p593_p3, %p587_p8 }
  0x63   : > { %453 = vmatpush3.bf16.msra.mxu0 %v524_v4 }
  0x66   : > { %455 = vmatmul.mubr.msk.bf16.vlgmr.msra.gmra.mrb[0].mxu0 %vm253_vm1, %v525_v5 }
 0x139   : > { %v291_v7 = vpop.f32.mrb[0].mxu0 }
 0x13a   : > { %v292_v8 = vadd.f32 %v418_v6, %v291_v7  ;;  %v456_v9 = vpop.f32.mrb[1].mxu0 }
 0x13b   : > { %v294_v10 = vpop.f32.mrb[2].mxu0 }
 0x13c   : > { %v295_v11 = vadd.f32 %v418_v6, %v294_v10  ;;  %v457_v12 = vpop.f32.mrb[3].mxu0  ;;  %v298_v13 = vmax.f32 %v292_v8, 0.0 }
 0x13e   : > { %v299_v14 = vmax.f32 %v295_v11, 0.0 }
 0x140   : > { %v439_v15 = vpack.c.bf16 %v299_v14, %v298_v13 }
 0x142   : > { %440 = vst [vmem:[%s203_s8] sm:$0xff] %v439_v15  }
 0x143   : > { %597 = shalt.err (!%p594_p7)
}
 0x144   : > { %s598_s30 = scalar_lea.hbm %s843_s5, 128  ;;  %s602_s10 = scalar_lea.hbm %s889_s3, 512 }
 0x145   : > { %p599_p9 = scmp.ne.s32.totalorder %s843_s5, %s598_s30  ;;  %p603_p5 = scmp.lt.u32.totalorder %s843_s5, %s889_s3 }
 0x146   : > { %p604_p2 = scmp.lt.u32.totalorder %s602_s10, %s598_s30  ;;  %p606_p4 = scmp.lt.u32.totalorder %s598_s30, %s843_s5 }
 0x147   : > { %p600_p1 = pnand %p599_p9, %p771_p12 }
 0x148   : > { %p605_p10 = por %p604_p2, %p603_p5 }
 0x149   : > { %p601_p0 = pneg %p600_p1 }
 0x14a   : > { %p607_p6 = por %p606_p4, %p605_p10 }
 0x14c   : > { %p608_p8 = pnand %p607_p6, %p601_p0 }
 0x14e   : > { %611 = shalt.err (!%p608_p8)
}
 0x14f   : > { %s663_s20 = smov 64   ;;  %s664_s8 = smov 4  }
 0x150   : > { %464 = dma.vmem_to_hbm [thread:$0]  (%p771_p12), %s838_s9, 128, %s843_s5, %s311_s27, %s663_s20, %s663_s20, %s664_s8  }
 0x151 PF: > { %p481_p11 = scmp.ge.s32.totalorder %s654_s15, 2  ;;  %s339_s4 = sand.u32 1, %s642_s12  }
 0x152   : > { %p904_p13 = scmp.ne.s32.totalorder %s894_s19, 0  ;;  %s340_s25 = scalar_lea.sflag [#allocation4], %s339_s4 }
 0x154   : > { %p475_p3 = pnand %p481_p11, %p904_p13 }
 0x156   : > { %637 = dma.done.wait (!%p475_p3), %s340_s25, 128  }
 0x157   : > { %639 = vsyncadd (!%p475_p3), %s340_s25, 4294967168  ;;  %p17_p7 = scmp.ge.s32.totalorder %s738_s24, 6   ;;  %s905_s12 = smov %s646_s13 }
 0x158   : > { %s906_s13 = smov %s650_s14  ;;  %s907_s14 = smov %s767_s17 }
 0x159   : > { %s908_s15 = smov %s738_s24  ;;  %19 = sbr.rel (!%p17_p7) target bundleno = 6 (0x6), region = 81 }
 0x160   :  { %345 = vsyncpa [#allocation3], 1 }
 0x161   :  { %347 = vsyncpa [#allocation3 + $0x1], 1 }
 0x162   :  { %348 = vsyncpa [#allocation6], 1 }
 0x163   :  { %349 = vsyncpa [#allocation4], 1 }
 0x164   :  { %351 = vsyncpa [#allocation4 + $0x1], 1 }

</bundles_post_ra>
